<compile_context>
chip_gen: v6e
topology: v6e:2x2x1
jax: 0.10.0
libtpu: 0.0.40
codegen_flags: <defaults>
</compile_context>

<pallas_src>
import functools

import jax
import jax.numpy as jnp
import numpy as np
from jax.experimental import pallas as pl
from jax.experimental.pallas import tpu as pltpu


def _layer_norm(x, gamma, beta, *, fast, eps=1e-6):
    # Matches the reference LayerNorm: gamma*(x-mean)/(std+eps)+beta, unbiased std.
    d = x.shape[-1]
    mean = jnp.mean(x, axis=-1, keepdims=True)
    c = x - mean
    var = jnp.sum(c * c, axis=-1, keepdims=True) * (1.0 / (d - 1))
    denom = jnp.sqrt(var) + eps
    inv = pl.reciprocal(denom, approx=True) if fast else 1.0 / denom
    return gamma * c * inv + beta


def _encoder_layer_kernel(x_ref, ln1_g_ref, ln1_b_ref,
                          wqkv_ref, wo_ref,
                          w1_ref, b1_ref, w2_ref, b2_ref,
                          ln2_g_ref, ln2_b_ref, out_ref,
                          *, num_heads, fast):
    f32 = jnp.float32
    Bb, T, H = x_ref.shape
    BT = Bb * T
    cd = wqkv_ref.dtype                      # matmul compute dtype (bf16 or f32)
    hd_v = wo_ref.shape[1]
    vd = num_heads * hd_v
    kd = (wqkv_ref.shape[1] - vd) // 2
    hd_k = kd // num_heads
    G = num_heads * Bb

    x = x_ref[...].astype(f32).reshape(BT, H)          # (BT, H)

    # Time index per flattened row, for masking the k=3 conv edge rows.
    t_pos = jax.lax.broadcasted_iota(jnp.int32, (Bb, T, 1), 1).reshape(BT, 1)

    def shift_prev(a):      # row (b, t) <- (b, t-1); zero at t == 0
        return jnp.where(t_pos > 0, pltpu.roll(a, shift=1, axis=0), 0.0)

    def shift_next(a):      # row (b, t) <- (b, t+1); zero at t == T-1
        return jnp.where(t_pos < T - 1, pltpu.roll(a, shift=BT - 1, axis=0), 0.0)

    # ---- layer_norm_mha + multi-head self-attention --------------------------
    xn = _layer_norm(x, ln1_g_ref[...], ln1_b_ref[...], fast=fast)           # (BT, H)

    # ONE wide fused projection: [q | k | v]; the query scale is folded into wq.
    qkv = jnp.dot(xn.astype(cd), wqkv_ref[...],
                  preferred_element_type=f32)                                # (BT, 2kd+vd)

    def heads_to_batch(off, hd):
        # lane-slice each head, move heads onto the leading (batch) axis.
        parts = [qkv[:, off + n * hd: off + (n + 1) * hd] for n in range(num_heads)]
        return jnp.stack(parts, axis=0).reshape(G, T, hd)    # g = head * Bb + b

    q = heads_to_batch(0, hd_k).astype(cd)
    k = heads_to_batch(kd, hd_k).astype(cd)
    v = heads_to_batch(2 * kd, hd_v).astype(cd)

    # TODO(synk): additive src_masks / bias_mask attention masking not implemented
    # (both are None in this configuration).
    # TODO(synk): for large T, block the softmax over keys (flash-style m/l/acc)
    # so the f32 (G,T,T) logits never go fully resident; unnecessary at these T.
    logits = jnp.einsum('gqd,gkd->gqk', q, k, preferred_element_type=f32)    # (G,T,T)
    m = jnp.max(logits, axis=-1, keepdims=True)
    e = jnp.exp(logits - m)
    ssum = jnp.sum(e, axis=-1, keepdims=True)
    attn = e * (pl.reciprocal(ssum, approx=True) if fast else 1.0 / ssum)

    ctx = jnp.einsum('gqk,gkd->gqd', attn.astype(cd), v,
                     preferred_element_type=f32)                             # (G,T,hd_v)

    # Output projection: per-head batched matmul against pre-split wo, summed over
    # heads (math-equivalent to concat(ctx_heads) @ wo, without the lane concat).
    ctx_h = ctx.reshape(num_heads, BT, hd_v).astype(cd)
    y = jnp.einsum('nte,neh->nth', ctx_h, wo_ref[...],
                   preferred_element_type=f32)                               # (heads,BT,H)
    y = jnp.sum(y, axis=0)                                                   # (BT, H)

    x1 = x + y                                          # residual (layer_dropout = 0)

    # ---- layer_norm_ffn + positionwise conv-conv FFN --------------------------
    xn2 = _layer_norm(x1, ln2_g_ref[...], ln2_b_ref[...], fast=fast)         # (BT, H)

    # conv1 (Cin = H, small): fuse the three taps into one K=3H matmul.
    taps = jnp.concatenate([shift_prev(xn2).astype(cd), xn2.astype(cd),
                            shift_next(xn2).astype(cd)], axis=-1)            # (BT, 3H)
    h1 = jnp.dot(taps, w1_ref[...], preferred_element_type=f32) + b1_ref[...]
    h1 = jnp.maximum(h1, 0.0)                           # relu_dropout = 0, (BT, F)

    # conv2 (Cin = F, wide): accumulate three K=F matmuls, no (BT, 3F) taps buffer.
    acc = jnp.dot(h1.astype(cd), w2_ref[1], preferred_element_type=f32)          # x[t]
    acc = acc + jnp.dot(shift_prev(h1).astype(cd), w2_ref[0],
                        preferred_element_type=f32)                              # x[t-1]
    acc = acc + jnp.dot(shift_next(h1).astype(cd), w2_ref[2],
                        preferred_element_type=f32)                              # x[t+1]
    h2 = jnp.maximum(acc + b2_ref[...], 0.0)            # ReLU after the last conv too

    # TODO(synk): when H is not a multiple of 128, a lane-dense (Bb, T*H) output
    # slab would avoid masked partial stores; kept the natural (B, T, H) layout.
    out_ref[...] = (h2 + x1).reshape(Bb, T, H).astype(out_ref.dtype)


def _estimate_block_vmem_bytes(block_b, T, H, kd, vd, F, num_heads,
                               cd_bytes, weight_bytes, x_itemsize):
    """Rough resident-VMEM footprint of one grid step (used to size block_b)."""
    f32 = 4
    BT = block_b * T
    G = num_heads * block_b
    hd_k, hd_v = kd // num_heads, vd // num_heads
    a = 0
    a += 6 * BT * H * f32                               # x, xn, y, x1, xn2, h2
    a += 4 * BT * H * cd_bytes                          # compute-dtype casts
    a += BT * (2 * kd + vd) * f32                       # fused qkv result
    a += G * T * (2 * hd_k + hd_v) * (f32 + cd_bytes)   # per-head q/k/v (+ casts)
    a += 4 * G * T * T * f32                            # logits/e/attn: 3-4 live copies
    a += G * T * T * cd_bytes                           # attn cast for the PV matmul
    a += G * T * hd_v * (f32 + cd_bytes)                # ctx (+ cast)
    a += num_heads * BT * H * f32                       # per-head out-proj before sum
    a += BT * 3 * H * cd_bytes                          # conv1 taps
    a += 2 * BT * F * f32 + 2 * BT * F * cd_bytes       # h1 + live shifted copy + casts
    a += 2 * 2 * block_b * T * H * x_itemsize           # double-buffered act in/out blocks
    a += weight_bytes                                   # single-buffered weights
    return a


def encoder_layer_forward(x, params, num_heads, *, fast=True, block_b=None):
    B, T, H = x.shape
    cd = jnp.bfloat16 if fast else jnp.float32
    f32 = jnp.float32

    kd = params["wq"].shape[1]
    vd = params["wv"].shape[1]
    hd_k, hd_v = kd // num_heads, vd // num_heads
    F = params["w1"].shape[2]
    scale = float(hd_k) ** -0.5

    # Host-side weight prep: fused [q|k|v] projection with the query scale folded
    # into wq, wo pre-split by head, conv1 taps folded into the contraction dim,
    # conv2 taps kept separate (accumulated in the kernel).
    wqkv = jnp.concatenate([params["wq"] * scale, params["wk"], params["wv"]],
                           axis=1).astype(cd)                       # (H, 2*kd+vd)
    wo_h = params["wo"].reshape(num_heads, hd_v, H).astype(cd)      # (heads, hd_v, H)
    w1 = params["w1"].reshape(3 * H, F).astype(cd)                  # rows [prev|center|next]
    w2 = params["w2"].astype(cd)                                    # (3, F, H)

    weights = [
        params["ln1_g"].astype(f32), params["ln1_b"].astype(f32),
        wqkv, wo_h,
        w1, params["b1"].astype(f32), w2, params["b2"].astype(f32),
        params["ln2_g"].astype(f32), params["ln2_b"].astype(f32),
    ]
    weight_bytes = sum(int(np.prod(w.shape)) * w.dtype.itemsize for w in weights)

    # Generation-aware VMEM budget: ~80% of physical VMEM (128 MiB on v5e/v6e,
    # 64 MiB on v7x); conservative 64 MiB fallback if the query is unavailable.
    try:
        cap = int(getattr(pltpu.get_tpu_info(), "vmem_capacity_bytes"))
    except Exception:
        cap = 64 << 20
    vmem_budget = int(0.8 * cap)

    cd_bytes = jnp.dtype(cd).itemsize
    if block_b is None:
        divisors = [d for d in range(1, B + 1) if B % d == 0]
        # Prefer grid >= 2: keeps both v7x TensorCores busy and lets the Pallas
        # pipeline overlap DMA with compute across grid steps.
        candidates = [d for d in divisors if B // d >= 2] or divisors
        block_b = 1
        for d in sorted(candidates, reverse=True):
            if _estimate_block_vmem_bytes(d, T, H, kd, vd, F, num_heads,
                                          cd_bytes, weight_bytes,
                                          x.dtype.itemsize) <= vmem_budget:
                block_b = d
                break
    assert B % block_b == 0, "batch must be divisible by block_b"

    def weight_spec(arr):
        nd = arr.ndim
        idx = lambda b, _nd=nd: (0,) * _nd
        try:
            # Grid-invariant blocks: single-buffer them (double-buffering only
            # doubles their VMEM footprint with no overlap benefit).
            return pl.BlockSpec(arr.shape, idx, pipeline_mode=pl.Buffered(1))
        except Exception:
            return pl.BlockSpec(arr.shape, idx)

    in_specs = [pl.BlockSpec((block_b, T, H), lambda b: (b, 0, 0))]
    in_specs += [weight_spec(w) for w in weights]

    kernel = functools.partial(_encoder_layer_kernel, num_heads=num_heads, fast=fast)

    return pl.pallas_call(
        kernel,
        out_shape=jax.ShapeDtypeStruct((B, T, H), x.dtype),
        grid=(B // block_b,),
        in_specs=in_specs,
        out_specs=pl.BlockSpec((block_b, T, H), lambda b: (b, 0, 0)),
        compiler_params=pltpu.CompilerParams(
            dimension_semantics=("parallel",),
            vmem_limit_bytes=vmem_budget,
        ),
    )(x, *weights)


def ref_forward(x, params, num_heads):
    """Pure-JAX reference with the same semantics, for a correctness check."""
    def ln(z, g, b, eps=1e-6):
        mean = z.mean(-1, keepdims=True)
        c = z - mean
        var = (c * c).sum(-1, keepdims=True) / (z.shape[-1] - 1)
        return g * c / (jnp.sqrt(var) + eps) + b

    B, T, H = x.shape
    kd = params["wq"].shape[1]
    vd = params["wv"].shape[1]
    hd_k, hd_v = kd // num_heads, vd // num_heads

    xn = ln(x, params["ln1_g"][0], params["ln1_b"][0])
    q = (xn @ params["wq"]).reshape(B, T, num_heads, hd_k).transpose(0, 2, 1, 3) * hd_k ** -0.5
    k = (xn @ params["wk"]).reshape(B, T, num_heads, hd_k).transpose(0, 2, 1, 3)
    v = (xn @ params["wv"]).reshape(B, T, num_heads, hd_v).transpose(0, 2, 1, 3)
    attn = jax.nn.softmax(jnp.einsum("bhqd,bhkd->bhqk", q, k), axis=-1)
    ctx = jnp.einsum("bhqk,bhkd->bhqd", attn, v).transpose(0, 2, 1, 3).reshape(B, T, vd)
    x1 = x + ctx @ params["wo"]

    xn2 = ln(x1, params["ln2_g"][0], params["ln2_b"][0])

    def conv(inp, w3, bias):
        xp = jnp.pad(inp, ((0, 0), (1, 1), (0, 0)))
        return (xp[:, :T] @ w3[0] + xp[:, 1:T + 1] @ w3[1]
                + xp[:, 2:T + 2] @ w3[2] + bias)

    h1 = jax.nn.relu(conv(xn2, params["w1"], params["b1"][0]))
    h2 = jax.nn.relu(conv(h1, params["w2"], params["b2"][0]))
    return h2 + x1


if __name__ == "__main__":
    B, T, H = 2, 8, 32
    total_key_depth = 32
    total_value_depth = 32
    filter_size = 64
    num_heads = 4

    key = jax.random.PRNGKey(0)
    ks = jax.random.split(key, 13)
    s = 0.1
    f32 = jnp.float32

    params = {
        "ln1_g": (1.0 + s * jax.random.normal(ks[0], (1, H))).astype(f32),
        "ln1_b": (s * jax.random.normal(ks[1], (1, H))).astype(f32),
        # Linear weights pre-transposed to (in, out) so the kernel does x @ W.
        "wq": (s * jax.random.normal(ks[2], (H, total_key_depth))).astype(f32),
        "wk": (s * jax.random.normal(ks[3], (H, total_key_depth))).astype(f32),
        "wv": (s * jax.random.normal(ks[4], (H, total_value_depth))).astype(f32),
        "wo": (s * jax.random.normal(ks[5], (total_value_depth, H))).astype(f32),
        # Conv1d(k=3) weights stored as (3, Cin, Cout) (= torch (Cout,Cin,3) transposed).
        "w1": (s * jax.random.normal(ks[6], (3, H, filter_size))).astype(f32),
        "b1": (s * jax.random.normal(ks[7], (1, filter_size))).astype(f32),
        "w2": (s * jax.random.normal(ks[8], (3, filter_size, H))).astype(f32),
        "b2": (s * jax.random.normal(ks[9], (1, H))).astype(f32),
        "ln2_g": (1.0 + s * jax.random.normal(ks[10], (1, H))).astype(f32),
        "ln2_b": (s * jax.random.normal(ks[11], (1, H))).astype(f32),
    }

    x = jax.random.normal(ks[12], (B, T, H), dtype=f32)

    ref = jax.block_until_ready(ref_forward(x, params, num_heads))

    # Exact path (f32 matmuls, exact divisions): tight tolerance.
    out_exact = jax.block_until_ready(
        encoder_layer_forward(x, params, num_heads, fast=False))
    np.testing.assert_allclose(np.asarray(out_exact), np.asarray(ref),
                               rtol=1e-3, atol=1e-3)

    # Fast path (bf16 matmul operands + EUP approx reciprocals): looser tolerance.
    out_fast = jax.block_until_ready(
        encoder_layer_forward(x, params, num_heads, fast=True))
    np.testing.assert_allclose(np.asarray(out_fast), np.asarray(ref),
                               rtol=5e-2, atol=5e-2)

    print("KERNEL_OK")
</pallas_src>

<mosaic_0001>
module attributes {stable_mosaic.version = 11 : i64} {
  func.func @_encoder_layer_kernel(%arg0: i32, %arg1: memref<1x8x32xf32, #tpu.memory_space<vmem>>, %arg2: memref<1x32xf32, #tpu.memory_space<vmem>>, %arg3: memref<1x32xf32, #tpu.memory_space<vmem>>, %arg4: memref<32x96xf32, #tpu.memory_space<vmem>>, %arg5: memref<4x8x32xf32, #tpu.memory_space<vmem>>, %arg6: memref<96x64xf32, #tpu.memory_space<vmem>>, %arg7: memref<1x64xf32, #tpu.memory_space<vmem>>, %arg8: memref<3x64x32xf32, #tpu.memory_space<vmem>>, %arg9: memref<1x32xf32, #tpu.memory_space<vmem>>, %arg10: memref<1x32xf32, #tpu.memory_space<vmem>>, %arg11: memref<1x32xf32, #tpu.memory_space<vmem>>, %arg12: memref<1x8x32xf32, #tpu.memory_space<vmem>>) attributes {dimension_semantics = [#tpu.dimension_semantics<parallel>], iteration_bounds = array<i64: 2>, scalar_prefetch = 0 : i64, scratch_operands = 0 : i64, tpu.core_type = #tpu.core_type<tc>, window_params = [{transform_indices = @transform_0, window_bounds = array<i64: 1, 8, 32>}, {pipeline_mode = #tpu.pipeline_mode<synchronous>, transform_indices = @transform_1, window_bounds = array<i64: 1, 32>}, {pipeline_mode = #tpu.pipeline_mode<synchronous>, transform_indices = @transform_2, window_bounds = array<i64: 1, 32>}, {pipeline_mode = #tpu.pipeline_mode<synchronous>, transform_indices = @transform_3, window_bounds = array<i64: 32, 96>}, {pipeline_mode = #tpu.pipeline_mode<synchronous>, transform_indices = @transform_4, window_bounds = array<i64: 4, 8, 32>}, {pipeline_mode = #tpu.pipeline_mode<synchronous>, transform_indices = @transform_5, window_bounds = array<i64: 96, 64>}, {pipeline_mode = #tpu.pipeline_mode<synchronous>, transform_indices = @transform_6, window_bounds = array<i64: 1, 64>}, {pipeline_mode = #tpu.pipeline_mode<synchronous>, transform_indices = @transform_7, window_bounds = array<i64: 3, 64, 32>}, {pipeline_mode = #tpu.pipeline_mode<synchronous>, transform_indices = @transform_8, window_bounds = array<i64: 1, 32>}, {pipeline_mode = #tpu.pipeline_mode<synchronous>, transform_indices = @transform_9, window_bounds = array<i64: 1, 32>}, {pipeline_mode = #tpu.pipeline_mode<synchronous>, transform_indices = @transform_10, window_bounds = array<i64: 1, 32>}, {transform_indices = @transform_11, window_bounds = array<i64: 1, 8, 32>}]} {
    %c0 = arith.constant 0 : index
    %c0_0 = arith.constant 0 : index
    %c0_1 = arith.constant 0 : index
    %0 = vector.load %arg1[%c0, %c0_0, %c0_1] : memref<1x8x32xf32, #tpu.memory_space<vmem>>, vector<1x8x32xf32>
    %1 = vector.shape_cast %0 : vector<1x8x32xf32> to vector<8x32xf32>
    %2 = tpu.iota {dimensions = array<i32: 1>} : vector<1x8x1xi32>
    %3 = vector.shape_cast %2 : vector<1x8x1xi32> to vector<8x1xi32>
    %c0_2 = arith.constant 0 : index
    %c0_3 = arith.constant 0 : index
    %4 = vector.load %arg2[%c0_2, %c0_3] : memref<1x32xf32, #tpu.memory_space<vmem>>, vector<1x32xf32>
    %c0_4 = arith.constant 0 : index
    %c0_5 = arith.constant 0 : index
    %5 = vector.load %arg3[%c0_4, %c0_5] : memref<1x32xf32, #tpu.memory_space<vmem>>, vector<1x32xf32>
    %cst = arith.constant dense<0.000000e+00> : vector<8xf32>
    %6 = vector.multi_reduction <add>, %1, %cst [1] : vector<8x32xf32> to vector<8xf32>
    %7 = vector.shape_cast %6 : vector<8xf32> to vector<8x1xf32>
    %cst_6 = arith.constant 3.200000e+01 : f32
    %8 = vector.broadcast %cst_6 : f32 to vector<8x1xf32>
    %9 = arith.divf %7, %8 : vector<8x1xf32>
    %10 = vector.broadcast %9 : vector<8x1xf32> to vector<8x32xf32>
    %11 = arith.subf %1, %10 : vector<8x32xf32>
    %12 = arith.mulf %11, %11 : vector<8x32xf32>
    %cst_7 = arith.constant dense<0.000000e+00> : vector<8xf32>
    %13 = vector.multi_reduction <add>, %12, %cst_7 [1] : vector<8x32xf32> to vector<8xf32>
    %14 = vector.shape_cast %13 : vector<8xf32> to vector<8x1xf32>
    %cst_8 = arith.constant 0.0322580636 : f32
    %15 = vector.broadcast %cst_8 : f32 to vector<8x1xf32>
    %16 = arith.mulf %14, %15 : vector<8x1xf32>
    %17 = math.sqrt %16 : vector<8x1xf32>
    %cst_9 = arith.constant 9.99999997E-7 : f32
    %18 = vector.broadcast %cst_9 : f32 to vector<8x1xf32>
    %19 = arith.addf %17, %18 : vector<8x1xf32>
    %cst_10 = arith.constant 1.000000e+00 : f32
    %20 = vector.broadcast %cst_10 : f32 to vector<8x1xf32>
    %21 = arith.divf %20, %19 : vector<8x1xf32>
    %22 = vector.broadcast %4 : vector<1x32xf32> to vector<8x32xf32>
    %23 = arith.mulf %22, %11 : vector<8x32xf32>
    %24 = vector.broadcast %21 : vector<8x1xf32> to vector<8x32xf32>
    %25 = arith.mulf %23, %24 : vector<8x32xf32>
    %26 = vector.broadcast %5 : vector<1x32xf32> to vector<8x32xf32>
    %27 = arith.addf %25, %26 : vector<8x32xf32>
    %c0_11 = arith.constant 0 : index
    %c0_12 = arith.constant 0 : index
    %28 = vector.load %arg4[%c0_11, %c0_12] : memref<32x96xf32, #tpu.memory_space<vmem>>, vector<32x96xf32>
    %cst_13 = arith.constant dense<0.000000e+00> : vector<8x96xf32>
    %29 = tpu.matmul %27, %28, %cst_13 {dimension_numbers = #tpu.dot_dimension_numbers<[1], [0], [0], [1], [0, 0, 1, 1], [], []>} : vector<8x32xf32>, vector<32x96xf32>, vector<8x96xf32> -> vector<8x96xf32>
    %30 = vector.extract_strided_slice %29 {offsets = [0, 0], sizes = [8, 8], strides = [1, 1]} : vector<8x96xf32> to vector<8x8xf32>
    %31 = vector.extract_strided_slice %29 {offsets = [0, 8], sizes = [8, 8], strides = [1, 1]} : vector<8x96xf32> to vector<8x8xf32>
    %32 = vector.extract_strided_slice %29 {offsets = [0, 16], sizes = [8, 8], strides = [1, 1]} : vector<8x96xf32> to vector<8x8xf32>
    %33 = vector.extract_strided_slice %29 {offsets = [0, 24], sizes = [8, 8], strides = [1, 1]} : vector<8x96xf32> to vector<8x8xf32>
    %34 = vector.shape_cast %30 : vector<8x8xf32> to vector<1x8x8xf32>
    %35 = vector.shape_cast %31 : vector<8x8xf32> to vector<1x8x8xf32>
    %36 = vector.shape_cast %32 : vector<8x8xf32> to vector<1x8x8xf32>
    %37 = vector.shape_cast %33 : vector<8x8xf32> to vector<1x8x8xf32>
    %38 = tpu.concatenate %34, %35, %36, %37 in 0 : vector<1x8x8xf32>, vector<1x8x8xf32>, vector<1x8x8xf32>, vector<1x8x8xf32> -> vector<4x8x8xf32>
    %39 = vector.extract_strided_slice %29 {offsets = [0, 32], sizes = [8, 8], strides = [1, 1]} : vector<8x96xf32> to vector<8x8xf32>
    %40 = vector.extract_strided_slice %29 {offsets = [0, 40], sizes = [8, 8], strides = [1, 1]} : vector<8x96xf32> to vector<8x8xf32>
    %41 = vector.extract_strided_slice %29 {offsets = [0, 48], sizes = [8, 8], strides = [1, 1]} : vector<8x96xf32> to vector<8x8xf32>
    %42 = vector.extract_strided_slice %29 {offsets = [0, 56], sizes = [8, 8], strides = [1, 1]} : vector<8x96xf32> to vector<8x8xf32>
    %43 = vector.shape_cast %39 : vector<8x8xf32> to vector<1x8x8xf32>
    %44 = vector.shape_cast %40 : vector<8x8xf32> to vector<1x8x8xf32>
    %45 = vector.shape_cast %41 : vector<8x8xf32> to vector<1x8x8xf32>
    %46 = vector.shape_cast %42 : vector<8x8xf32> to vector<1x8x8xf32>
    %47 = tpu.concatenate %43, %44, %45, %46 in 0 : vector<1x8x8xf32>, vector<1x8x8xf32>, vector<1x8x8xf32>, vector<1x8x8xf32> -> vector<4x8x8xf32>
    %48 = vector.extract_strided_slice %29 {offsets = [0, 64], sizes = [8, 8], strides = [1, 1]} : vector<8x96xf32> to vector<8x8xf32>
    %49 = vector.extract_strided_slice %29 {offsets = [0, 72], sizes = [8, 8], strides = [1, 1]} : vector<8x96xf32> to vector<8x8xf32>
    %50 = vector.extract_strided_slice %29 {offsets = [0, 80], sizes = [8, 8], strides = [1, 1]} : vector<8x96xf32> to vector<8x8xf32>
    %51 = vector.extract_strided_slice %29 {offsets = [0, 88], sizes = [8, 8], strides = [1, 1]} : vector<8x96xf32> to vector<8x8xf32>
    %52 = vector.shape_cast %48 : vector<8x8xf32> to vector<1x8x8xf32>
    %53 = vector.shape_cast %49 : vector<8x8xf32> to vector<1x8x8xf32>
    %54 = vector.shape_cast %50 : vector<8x8xf32> to vector<1x8x8xf32>
    %55 = vector.shape_cast %51 : vector<8x8xf32> to vector<1x8x8xf32>
    %56 = tpu.concatenate %52, %53, %54, %55 in 0 : vector<1x8x8xf32>, vector<1x8x8xf32>, vector<1x8x8xf32>, vector<1x8x8xf32> -> vector<4x8x8xf32>
    "tpu.trace_start"() <{level = 10 : i32, message = "gqd,gkd->gqk"}> : () -> ()
    %cst_14 = arith.constant dense<0.000000e+00> : vector<4x8x8xf32>
    %57 = tpu.matmul %38, %47, %cst_14 {dimension_numbers = #tpu.dot_dimension_numbers<[2], [2], [1], [1], [0, 0, 0, 1, 1, 1], [0], [0]>} : vector<4x8x8xf32>, vector<4x8x8xf32>, vector<4x8x8xf32> -> vector<4x8x8xf32>
    "tpu.trace_stop"() : () -> ()
    %cst_15 = arith.constant dense<0xFF800000> : vector<4x8xf32>
    %58 = vector.multi_reduction <maximumf>, %57, %cst_15 [2] : vector<4x8x8xf32> to vector<4x8xf32>
    %59 = vector.shape_cast %58 : vector<4x8xf32> to vector<4x8x1xf32>
    %60 = vector.broadcast %59 : vector<4x8x1xf32> to vector<4x8x8xf32>
    %61 = arith.subf %57, %60 : vector<4x8x8xf32>
    %62 = math.exp %61 : vector<4x8x8xf32>
    %cst_16 = arith.constant dense<0.000000e+00> : vector<4x8xf32>
    %63 = vector.multi_reduction <add>, %62, %cst_16 [2] : vector<4x8x8xf32> to vector<4x8xf32>
    %64 = vector.shape_cast %63 : vector<4x8xf32> to vector<4x8x1xf32>
    %cst_17 = arith.constant 1.000000e+00 : f32
    %65 = vector.broadcast %cst_17 : f32 to vector<4x8x1xf32>
    %66 = arith.divf %65, %64 : vector<4x8x1xf32>
    %67 = vector.broadcast %66 : vector<4x8x1xf32> to vector<4x8x8xf32>
    %68 = arith.mulf %62, %67 : vector<4x8x8xf32>
    "tpu.trace_start"() <{level = 10 : i32, message = "gqk,gkd->gqd"}> : () -> ()
    %cst_18 = arith.constant dense<0.000000e+00> : vector<4x8x8xf32>
    %69 = tpu.matmul %68, %56, %cst_18 {dimension_numbers = #tpu.dot_dimension_numbers<[2], [1], [1], [2], [0, 0, 0, 1, 1, 2], [0], [0]>} : vector<4x8x8xf32>, vector<4x8x8xf32>, vector<4x8x8xf32> -> vector<4x8x8xf32>
    "tpu.trace_stop"() : () -> ()
    %c0_19 = arith.constant 0 : index
    %c0_20 = arith.constant 0 : index
    %c0_21 = arith.constant 0 : index
    %70 = vector.load %arg5[%c0_19, %c0_20, %c0_21] : memref<4x8x32xf32, #tpu.memory_space<vmem>>, vector<4x8x32xf32>
    "tpu.trace_start"() <{level = 10 : i32, message = "nte,neh->nth"}> : () -> ()
    %cst_22 = arith.constant dense<0.000000e+00> : vector<4x8x32xf32>
    %71 = tpu.matmul %69, %70, %cst_22 {dimension_numbers = #tpu.dot_dimension_numbers<[2], [1], [1], [2], [0, 0, 0, 1, 1, 2], [0], [0]>} : vector<4x8x8xf32>, vector<4x8x32xf32>, vector<4x8x32xf32> -> vector<4x8x32xf32>
    "tpu.trace_stop"() : () -> ()
    %cst_23 = arith.constant dense<0.000000e+00> : vector<8x32xf32>
    %72 = vector.multi_reduction <add>, %71, %cst_23 [0] : vector<4x8x32xf32> to vector<8x32xf32>
    %73 = arith.addf %1, %72 : vector<8x32xf32>
    %c0_24 = arith.constant 0 : index
    %c0_25 = arith.constant 0 : index
    %74 = vector.load %arg10[%c0_24, %c0_25] : memref<1x32xf32, #tpu.memory_space<vmem>>, vector<1x32xf32>
    %c0_26 = arith.constant 0 : index
    %c0_27 = arith.constant 0 : index
    %75 = vector.load %arg11[%c0_26, %c0_27] : memref<1x32xf32, #tpu.memory_space<vmem>>, vector<1x32xf32>
    %cst_28 = arith.constant dense<0.000000e+00> : vector<8xf32>
    %76 = vector.multi_reduction <add>, %73, %cst_28 [1] : vector<8x32xf32> to vector<8xf32>
    %77 = vector.shape_cast %76 : vector<8xf32> to vector<8x1xf32>
    %cst_29 = arith.constant 3.200000e+01 : f32
    %78 = vector.broadcast %cst_29 : f32 to vector<8x1xf32>
    %79 = arith.divf %77, %78 : vector<8x1xf32>
    %80 = vector.broadcast %79 : vector<8x1xf32> to vector<8x32xf32>
    %81 = arith.subf %73, %80 : vector<8x32xf32>
    %82 = arith.mulf %81, %81 : vector<8x32xf32>
    %cst_30 = arith.constant dense<0.000000e+00> : vector<8xf32>
    %83 = vector.multi_reduction <add>, %82, %cst_30 [1] : vector<8x32xf32> to vector<8xf32>
    %84 = vector.shape_cast %83 : vector<8xf32> to vector<8x1xf32>
    %cst_31 = arith.constant 0.0322580636 : f32
    %85 = vector.broadcast %cst_31 : f32 to vector<8x1xf32>
    %86 = arith.mulf %84, %85 : vector<8x1xf32>
    %87 = math.sqrt %86 : vector<8x1xf32>
    %cst_32 = arith.constant 9.99999997E-7 : f32
    %88 = vector.broadcast %cst_32 : f32 to vector<8x1xf32>
    %89 = arith.addf %87, %88 : vector<8x1xf32>
    %cst_33 = arith.constant 1.000000e+00 : f32
    %90 = vector.broadcast %cst_33 : f32 to vector<8x1xf32>
    %91 = arith.divf %90, %89 : vector<8x1xf32>
    %92 = vector.broadcast %74 : vector<1x32xf32> to vector<8x32xf32>
    %93 = arith.mulf %92, %81 : vector<8x32xf32>
    %94 = vector.broadcast %91 : vector<8x1xf32> to vector<8x32xf32>
    %95 = arith.mulf %93, %94 : vector<8x32xf32>
    %96 = vector.broadcast %75 : vector<1x32xf32> to vector<8x32xf32>
    %97 = arith.addf %95, %96 : vector<8x32xf32>
    %c0_i32 = arith.constant 0 : i32
    %98 = vector.broadcast %c0_i32 : i32 to vector<8x1xi32>
    %99 = arith.cmpi sgt, %3, %98 : vector<8x1xi32>
    %c1_i32 = arith.constant 1 : i32
    %100 = tpu.dynamic_rotate %97 by %c1_i32 dim 0 : vector<8x32xf32>, i32 -> vector<8x32xf32>
    %cst_34 = arith.constant 0.000000e+00 : f32
    %101 = vector.shape_cast %99 : vector<8x1xi1> to vector<8x1xi1>
    %102 = vector.broadcast %101 : vector<8x1xi1> to vector<8x32xi1>
    %103 = vector.broadcast %cst_34 : f32 to vector<8x32xf32>
    %104 = arith.select %102, %100, %103 : vector<8x32xi1>, vector<8x32xf32>
    %c7_i32 = arith.constant 7 : i32
    %105 = vector.broadcast %c7_i32 : i32 to vector<8x1xi32>
    %106 = arith.cmpi slt, %3, %105 : vector<8x1xi32>
    %c7_i32_35 = arith.constant 7 : i32
    %107 = tpu.dynamic_rotate %97 by %c7_i32_35 dim 0 : vector<8x32xf32>, i32 -> vector<8x32xf32>
    %cst_36 = arith.constant 0.000000e+00 : f32
    %108 = vector.shape_cast %106 : vector<8x1xi1> to vector<8x1xi1>
    %109 = vector.broadcast %108 : vector<8x1xi1> to vector<8x32xi1>
    %110 = vector.broadcast %cst_36 : f32 to vector<8x32xf32>
    %111 = arith.select %109, %107, %110 : vector<8x32xi1>, vector<8x32xf32>
    %112 = tpu.concatenate %104, %97, %111 in 1 : vector<8x32xf32>, vector<8x32xf32>, vector<8x32xf32> -> vector<8x96xf32>
    %c0_37 = arith.constant 0 : index
    %c0_38 = arith.constant 0 : index
    %113 = vector.load %arg6[%c0_37, %c0_38] : memref<96x64xf32, #tpu.memory_space<vmem>>, vector<96x64xf32>
    %cst_39 = arith.constant dense<0.000000e+00> : vector<8x64xf32>
    %114 = tpu.matmul %112, %113, %cst_39 {dimension_numbers = #tpu.dot_dimension_numbers<[1], [0], [0], [1], [0, 0, 1, 1], [], []>} : vector<8x96xf32>, vector<96x64xf32>, vector<8x64xf32> -> vector<8x64xf32>
    %c0_40 = arith.constant 0 : index
    %c0_41 = arith.constant 0 : index
    %115 = vector.load %arg7[%c0_40, %c0_41] : memref<1x64xf32, #tpu.memory_space<vmem>>, vector<1x64xf32>
    %116 = vector.broadcast %115 : vector<1x64xf32> to vector<8x64xf32>
    %117 = arith.addf %114, %116 : vector<8x64xf32>
    %cst_42 = arith.constant 0.000000e+00 : f32
    %118 = vector.broadcast %cst_42 : f32 to vector<8x64xf32>
    %119 = arith.maximumf %117, %118 : vector<8x64xf32>
    %c1 = arith.constant 1 : index
    %c0_43 = arith.constant 0 : index
    %c0_44 = arith.constant 0 : index
    %120 = vector.load %arg8[%c1, %c0_43, %c0_44] : memref<3x64x32xf32, #tpu.memory_space<vmem>>, vector<1x64x32xf32>
    %121 = vector.shape_cast %120 : vector<1x64x32xf32> to vector<64x32xf32>
    %cst_45 = arith.constant dense<0.000000e+00> : vector<8x32xf32>
    %122 = tpu.matmul %119, %121, %cst_45 {dimension_numbers = #tpu.dot_dimension_numbers<[1], [0], [0], [1], [0, 0, 1, 1], [], []>} : vector<8x64xf32>, vector<64x32xf32>, vector<8x32xf32> -> vector<8x32xf32>
    %c0_i32_46 = arith.constant 0 : i32
    %123 = vector.broadcast %c0_i32_46 : i32 to vector<8x1xi32>
    %124 = arith.cmpi sgt, %3, %123 : vector<8x1xi32>
    %c1_i32_47 = arith.constant 1 : i32
    %125 = tpu.dynamic_rotate %119 by %c1_i32_47 dim 0 : vector<8x64xf32>, i32 -> vector<8x64xf32>
    %cst_48 = arith.constant 0.000000e+00 : f32
    %126 = vector.shape_cast %124 : vector<8x1xi1> to vector<8x1xi1>
    %127 = vector.broadcast %126 : vector<8x1xi1> to vector<8x64xi1>
    %128 = vector.broadcast %cst_48 : f32 to vector<8x64xf32>
    %129 = arith.select %127, %125, %128 : vector<8x64xi1>, vector<8x64xf32>
    %c0_49 = arith.constant 0 : index
    %c0_50 = arith.constant 0 : index
    %c0_51 = arith.constant 0 : index
    %130 = vector.load %arg8[%c0_49, %c0_50, %c0_51] : memref<3x64x32xf32, #tpu.memory_space<vmem>>, vector<1x64x32xf32>
    %131 = vector.shape_cast %130 : vector<1x64x32xf32> to vector<64x32xf32>
    %cst_52 = arith.constant dense<0.000000e+00> : vector<8x32xf32>
    %132 = tpu.matmul %129, %131, %cst_52 {dimension_numbers = #tpu.dot_dimension_numbers<[1], [0], [0], [1], [0, 0, 1, 1], [], []>} : vector<8x64xf32>, vector<64x32xf32>, vector<8x32xf32> -> vector<8x32xf32>
    %133 = arith.addf %122, %132 : vector<8x32xf32>
    %c7_i32_53 = arith.constant 7 : i32
    %134 = vector.broadcast %c7_i32_53 : i32 to vector<8x1xi32>
    %135 = arith.cmpi slt, %3, %134 : vector<8x1xi32>
    %c7_i32_54 = arith.constant 7 : i32
    %136 = tpu.dynamic_rotate %119 by %c7_i32_54 dim 0 : vector<8x64xf32>, i32 -> vector<8x64xf32>
    %cst_55 = arith.constant 0.000000e+00 : f32
    %137 = vector.shape_cast %135 : vector<8x1xi1> to vector<8x1xi1>
    %138 = vector.broadcast %137 : vector<8x1xi1> to vector<8x64xi1>
    %139 = vector.broadcast %cst_55 : f32 to vector<8x64xf32>
    %140 = arith.select %138, %136, %139 : vector<8x64xi1>, vector<8x64xf32>
    %c2 = arith.constant 2 : index
    %c0_56 = arith.constant 0 : index
    %c0_57 = arith.constant 0 : index
    %141 = vector.load %arg8[%c2, %c0_56, %c0_57] : memref<3x64x32xf32, #tpu.memory_space<vmem>>, vector<1x64x32xf32>
    %142 = vector.shape_cast %141 : vector<1x64x32xf32> to vector<64x32xf32>
    %cst_58 = arith.constant dense<0.000000e+00> : vector<8x32xf32>
    %143 = tpu.matmul %140, %142, %cst_58 {dimension_numbers = #tpu.dot_dimension_numbers<[1], [0], [0], [1], [0, 0, 1, 1], [], []>} : vector<8x64xf32>, vector<64x32xf32>, vector<8x32xf32> -> vector<8x32xf32>
    %144 = arith.addf %133, %143 : vector<8x32xf32>
    %c0_59 = arith.constant 0 : index
    %c0_60 = arith.constant 0 : index
    %145 = vector.load %arg9[%c0_59, %c0_60] : memref<1x32xf32, #tpu.memory_space<vmem>>, vector<1x32xf32>
    %146 = vector.broadcast %145 : vector<1x32xf32> to vector<8x32xf32>
    %147 = arith.addf %144, %146 : vector<8x32xf32>
    %cst_61 = arith.constant 0.000000e+00 : f32
    %148 = vector.broadcast %cst_61 : f32 to vector<8x32xf32>
    %149 = arith.maximumf %147, %148 : vector<8x32xf32>
    %150 = arith.addf %149, %73 : vector<8x32xf32>
    %151 = vector.shape_cast %150 : vector<8x32xf32> to vector<1x8x32xf32>
    %c0_62 = arith.constant 0 : index
    %c0_63 = arith.constant 0 : index
    %c0_64 = arith.constant 0 : index
    %152 = vector.load %arg12[%c0_62, %c0_63, %c0_64] : memref<1x8x32xf32, #tpu.memory_space<vmem>>, vector<1x8x32xf32>
    tpu.vector_store %arg12[%c0_62, %c0_63, %c0_64], %151 {strides = array<i32>} : memref<1x8x32xf32, #tpu.memory_space<vmem>>, vector<1x8x32xf32>,
    return
  }
  func.func @transform_0(%arg0: i32) -> (i32, i32, i32) {
    %c0_i32 = arith.constant 0 : i32
    %c0_i32_0 = arith.constant 0 : i32
    %c0_i32_1 = arith.constant 0 : i32
    return %arg0, %c0_i32, %c0_i32_0 : i32, i32, i32
  }
  func.func @transform_1(%arg0: i32) -> (i32, i32) {
    %c0_i32 = arith.constant 0 : i32
    %c0_i32_0 = arith.constant 0 : i32
    %c0_i32_1 = arith.constant 0 : i32
    return %c0_i32, %c0_i32_0 : i32, i32
  }
  func.func @transform_2(%arg0: i32) -> (i32, i32) {
    %c0_i32 = arith.constant 0 : i32
    %c0_i32_0 = arith.constant 0 : i32
    %c0_i32_1 = arith.constant 0 : i32
    return %c0_i32, %c0_i32_0 : i32, i32
  }
  func.func @transform_3(%arg0: i32) -> (i32, i32) {
    %c0_i32 = arith.constant 0 : i32
    %c0_i32_0 = arith.constant 0 : i32
    %c0_i32_1 = arith.constant 0 : i32
    return %c0_i32, %c0_i32_0 : i32, i32
  }
  func.func @transform_4(%arg0: i32) -> (i32, i32, i32) {
    %c0_i32 = arith.constant 0 : i32
    %c0_i32_0 = arith.constant 0 : i32
    %c0_i32_1 = arith.constant 0 : i32
    %c0_i32_2 = arith.constant 0 : i32
    return %c0_i32, %c0_i32_0, %c0_i32_1 : i32, i32, i32
  }
  func.func @transform_5(%arg0: i32) -> (i32, i32) {
    %c0_i32 = arith.constant 0 : i32
    %c0_i32_0 = arith.constant 0 : i32
    %c0_i32_1 = arith.constant 0 : i32
    return %c0_i32, %c0_i32_0 : i32, i32
  }
  func.func @transform_6(%arg0: i32) -> (i32, i32) {
    %c0_i32 = arith.constant 0 : i32
    %c0_i32_0 = arith.constant 0 : i32
    %c0_i32_1 = arith.constant 0 : i32
    return %c0_i32, %c0_i32_0 : i32, i32
  }
  func.func @transform_7(%arg0: i32) -> (i32, i32, i32) {
    %c0_i32 = arith.constant 0 : i32
    %c0_i32_0 = arith.constant 0 : i32
    %c0_i32_1 = arith.constant 0 : i32
    %c0_i32_2 = arith.constant 0 : i32
    return %c0_i32, %c0_i32_0, %c0_i32_1 : i32, i32, i32
  }
  func.func @transform_8(%arg0: i32) -> (i32, i32) {
    %c0_i32 = arith.constant 0 : i32
    %c0_i32_0 = arith.constant 0 : i32
    %c0_i32_1 = arith.constant 0 : i32
    return %c0_i32, %c0_i32_0 : i32, i32
  }
  func.func @transform_9(%arg0: i32) -> (i32, i32) {
    %c0_i32 = arith.constant 0 : i32
    %c0_i32_0 = arith.constant 0 : i32
    %c0_i32_1 = arith.constant 0 : i32
    return %c0_i32, %c0_i32_0 : i32, i32
  }
  func.func @transform_10(%arg0: i32) -> (i32, i32) {
    %c0_i32 = arith.constant 0 : i32
    %c0_i32_0 = arith.constant 0 : i32
    %c0_i32_1 = arith.constant 0 : i32
    return %c0_i32, %c0_i32_0 : i32, i32
  }
  func.func @transform_11(%arg0: i32) -> (i32, i32, i32) {
    %c0_i32 = arith.constant 0 : i32
    %c0_i32_0 = arith.constant 0 : i32
    %c0_i32_1 = arith.constant 0 : i32
    return %arg0, %c0_i32, %c0_i32_0 : i32, i32, i32
  }
}

</mosaic_0001>

<bundles_post_ra>
// kernel: tpu_custom_call.1
= control target key start
LH: loop header
LB: loop body
LE: loop exit
PB: predicated region body
PF: predicated region fallthrough
CT: control target
= control target key end

     0   :  { %s2838_s0 = inlined_call_operand.vmem [shape: f32[2,8,32], index: 0, kind: input, shape index: {}]   ;;  %s2839_s1 = inlined_call_operand.vmem [shape: f32[1,32], index: 1, kind: input, shape index: {}]   ;;  %s2840_s2 = inlined_call_operand.vmem [shape: f32[1,32], index: 2, kind: input, shape index: {}]   ;;  %s2841_s3 = inlined_call_operand.vmem [shape: f32[32,96], index: 3, kind: input, shape index: {}]   ;;  %s2842_s4 = inlined_call_operand.vmem [shape: f32[4,8,32], index: 4, kind: input, shape index: {}]   ;;  %s2843_s5 = inlined_call_operand.vmem [shape: f32[96,64], index: 5, kind: input, shape index: {}]   ;;  %s2844_s6 = inlined_call_operand.vmem [shape: f32[1,64], index: 6, kind: input, shape index: {}]   ;;  %s2845_s7 = inlined_call_operand.vmem [shape: f32[3,64,32], index: 7, kind: input, shape index: {}]   ;;  %s2846_s8 = inlined_call_operand.vmem [shape: f32[1,32], index: 8, kind: input, shape index: {}]   ;;  %s2847_s9 = inlined_call_operand.vmem [shape: f32[1,32], index: 9, kind: input, shape index: {}]   ;;  %s2848_s10 = inlined_call_operand.vmem [shape: f32[1,32], index: 10, kind: input, shape index: {}]   ;;  %s2849_s11 = inlined_call_operand.hbm [shape: f32[2,8,32], index: 11, kind: output, shape index: {}]  }
   0x1   :  { %2850 = sst [smem:[#allocation5_spill]] %s2838_s0 }
   0x2   :  { %2851 = sst [smem:[#allocation6_spill]] %s2839_s1 }
   0x3   :  { %16 = vsyncpa [#allocation3], 0 }
   0x4   :  { %18 = vsyncpa [#allocation3 + $0x1], 0  ;;  %s2434_s17 = smov 0   ;;  %s2436_s18 = smov 0  }
   0x5   :  { %s2438_s19 = smov 0   ;;  %s2440_s20 = smov 0  }
   0x6 LB: > { %s2455_s21 = sadd.s32 4294967295, %s2363_s20   ;;  %s1955_s22 = sadd.s32 4294967294, %s2363_s20   ;;  %s2363_s20 = sphi %s2440_s20, %s2859_s20   ;;  %s2359_s19 = sphi %s2438_s19, %s2858_s19   ;;  %s2355_s18 = sphi %s2436_s18, %s2857_s18   ;;  %s2351_s17 = sphi %s2434_s17, %s2856_s17  }
   0x7   : > { %s2459_s23 = sadd.s32 1, %s2363_s20   ;;  %s267_s24 = sadd.s32 1, %s2359_s19 }
   0x8   : > { %s264_s25 = ssub.s32 %s2363_s20, %s2459_s23  ;;  %p277_p0 = scmp.ne.s32.totalorder %s2359_s19, %s2355_s18 }
   0x9   : > { %p265_p1 = scmp.eq.s32.totalorder %s264_s25, 0  ;;  %p278_p2 = scmp.eq.s32.totalorder %s2455_s21, 1 }
   0xa   : > { %p283_p3 = scmp.ne.s32.totalorder %s2355_s18, %s2351_s17  ;;  %p284_p4 = scmp.eq.s32.totalorder %s1955_s22, 1 }
   0xb   : > { %s2470_s26 = scalar_select %p265_p1, %s2359_s19, %s267_s24  }
   0xc   : > { %p2472_p5 = por %p278_p2, %p277_p0  ;;  %p2476_p6 = por %p284_p4, %p283_p3 }
   0xd   : > { %p1958_p7 = scmp.ge.s32.totalorder %s2363_s20, 1  ;;  %p339_p8 = scmp.lt.s32.totalorder %s2363_s20, 3 }
   0xf   : > { %p340_p9 = pnand %p1958_p7, %p339_p8 }
  0x10   : > { %p378_p10 = scmp.lt.s32.totalorder (!%p340_p9), %s2455_s21, 1  ;;  %s2854_s0 = sld [smem:[#allocation5_spill]] (!%p340_p9) }
  0x11   : > { %343 = sbr.rel (%p340_p9) target bundleno = 2556 (0x9fc), region = 64  ;;  %s2855_s1 = sld [smem:[#allocation6_spill]] (!%p340_p9) }
  0x12   : > { %s2367_s22 = smov (!%p340_p9), 104   ;;  %s2368_s24 = smov (!%p340_p9), 120  }
  0x13   : > { %s2369_s25 = smov (!%p340_p9), 112   ;;  %s2373_s16 = smov (!%p340_p9), [#allocation2]  }
  0x16   : > { %s379_s29 = scalar_select %p378_p10, %s2455_s21, 1  ;;  %vm387_vm0 = vcmask 261120   ;;  %v427_v7 = vld [vmem:[%s2841_s3 + $0x18] sm:$0xff]  ;;  %v2365_v8 = vmov 0.0   ;;  %v426_v9 = vld [vmem:[%s2841_s3 + $0x10] sm:$0xff]  ;;  %vm2366_vm1 = vmmov 0  }
  0x17   : > { %2077 = vmatprep.subr.mxu0 %v2365_v8  ;;  %2085 = vmatprep.mubr.msk.f32.mxu0 %vm2366_vm1, %v2365_v8  ;;  %v425_v10 = vld [vmem:[%s2841_s3 + $0x8] sm:$0xff]  ;;  %v424_v11 = vld [vmem:[%s2841_s3] sm:$0xff]  ;;  %vm510_vm4 = vcmask 64512   ;;  %vm1525_vm9 = vcmask 523264   ;;  %vm1546_vm10 = vcmask 785408  }
  0x18   : > { %s1960_s30 = sshll.u32 %s379_s29, 3  ;;  %2078 = vmatpush3.msra.mxu0 %v427_v7  ;;  %2088 = vmatprep.subr.mxu1 %v2365_v8  ;;  %v1961_v20 = vld [vmem:[%s2855_s1] ss:$0 sm:$0xff]  ;;  %s2370_s29 = smov 96  }
  0x19   : > { %s381_s14 = scalar_lea.vmem %s2854_s0, %s1960_s30  ;;  %2079 = vmatprep.subr.mxu0 %v2365_v8  ;;  %2090 = vmatprep.mubr.msk.f32.mxu1 %vm2366_vm1, %v2365_v8  ;;  %v1962_v23 = vld [vmem:[%s2840_s2] ss:$0 sm:$0xff]  ;;  %s2371_s30 = smov 64  }
  0x1a   : > { %v2487_v0 = vld [vmem:[%s381_s14] sm:$0xff]  ;;  %2080 = vmatpush3.msra.mxu0 %v426_v9 }
  0x1b   : > { %v388_v1 = vsel %vm387_vm0, %v2487_v0, 0.0  ;;  %2081 = vmatprep.subr.mxu0 %v2365_v8 }
  0x1c   : > { %389 = vadd.xlane.f32.xlu0 %v388_v1  ;;  %2082 = vmatpush3.msra.mxu0 %v425_v10 }
  0x1d   : > { %2083 = vmatprep.subr.mxu0 %v2365_v8 }
  0x1e   : > { %2084 = vmatpush3.msra.mxu0 %v424_v11 }
  0x1f   : > { %2108 = vmatprep.subr.mxu0 %v2365_v8 }
  0xa5   : > { %v390_v2 = vpop.xlane.xlu0 %389 }
  0xa6   : > { %v392_v3 = vmul.f32 0.03125, %v390_v2 }
  0xa8   : > { %v393_v4 = vsub.f32 %v2487_v0, %v392_v3 }
  0xaa   : > { %v394_v5 = vmul.f32 %v393_v4, %v393_v4  ;;  %v415_v21 = vmul.f32 %v1961_v20, %v393_v4 }
  0xac   : > { %v395_v6 = vsel %vm387_vm0, %v394_v5, 0.0 }
  0xad   : > { %396 = vadd.xlane.f32.xlu0 %v395_v6 }
 0x136   : > { %v397_v12 = vpop.xlane.xlu0 %396 }
 0x137   : > { %v398_v13 = vmul.f32 0.032258064, %v397_v12 }
 0x139   : > { %2279 = vrsqrt.f32 %v398_v13  ;;  %vm401_vm2 = vcmp.eq.f32.partialorder %v398_v13, inf  ;;  %v404_v16 = vand.u32 2147483648, %v398_v13  ;;  %vm403_vm3 = vcmp.eq.f32.partialorder %v398_v13, 0.0 }
 0x146   : > { %v2280_v14 = vpop.eup %2279 }
 0x147   : > { %v400_v15 = vmul.f32 %v2280_v14, %v398_v13 }
 0x149   : > { %v402_v17 = vsel %vm401_vm2, %v398_v13, %v400_v15 }
 0x14a   : > { %v405_v18 = vsel %vm403_vm3, %v404_v16, %v402_v17 }
 0x14b   : > { %v406_v19 = vadd.f32 1e-06, %v405_v18 }
 0x14d   : > { %2281 = vrcp.f32 %v406_v19  ;;  %v1165_v19 = vld [vmem:[%s2842_s4] sm:$0xff] }
 0x15a   : > { %v2282_v22 = vpop.eup %2281 }
 0x15b   : > { %v416_v24 = vmul.f32 %v2282_v22, %v415_v21  ;;  %v1166_v22 = vld [vmem:[%s2842_s4 + $0x8] sm:$0xff] }
 0x15d   : > { %v423_v25 = vadd.f32 %v1962_v23, %v416_v24  ;;  %v1167_v23 = vld [vmem:[%s2842_s4 + $0x10] sm:$0xff] }
 0x15f   : > { %2086 = vmatmul.mubr.msk.f32.vlgmr.msra.gmra.mxu0 %vm387_vm0, %v423_v25 }
 0x160   : > { %2110 = vmatprep.mubr.msk.f32.mxu0 %vm2366_vm1, %v2365_v8 }
 0x21f   : > { %v497_v26 = vpop.f32.mrf.mxu0 }
 0x220   : > { %506 = vrot.lane.b32.xlu0 %v497_v26, %s2367_s22  ;;  %502 = vrot.lane.b32.xlu1 %v497_v26, %s2368_s24  ;;  %s2005_s22 = sshll.u32 %s2455_s21, 7  ;;  %s2307_s21 = sshll.u32 %s2373_s16, 4  ;;  %s2308_s21 = int_to_ptr.vmem [resolvable:$false] %s2307_s21 }
 0x221   : > { %v2087_v27 = vpop.f32.mrf.mxu0  ;;  %s1894_s13 = scalar_lea.hbm %s2849_s11, %s2005_s22 }
 0x224   : > { %504 = vrot.lane.b32.xlu1 %v497_v26, %s2369_s25 }
 0x228   : > { %508 = vrot.lane.b32.xlu1 %v497_v26, %s2370_s29 }
 0x292   : > { %v2524_v28 = vpop.permute.xlu1 %502  ;;  %v2530_v30 = vpop.permute.xlu0 %506 }
 0x293   : > { %585 = vrot.lane.b32.xlu1 %v2524_v28, %s2370_s29 }
 0x296   : > { %v2527_v29 = vpop.permute.xlu1 %504 }
 0x297   : > { %661 = vrot.lane.b32.xlu1 %v2527_v29, %s2370_s29 }
 0x29a   : > { %v509_v31 = vpop.permute.xlu1 %508 }
 0x29b   : > { %737 = vrot.lane.b32.xlu1 %v2530_v30, %s2370_s29  ;;  %2089 = vmatpush3.xpose.msk.msra.mxu1 %vm510_vm4, %v509_v31  ;;  %s2372_s29 = smov 32  }
 0x29c   : > { %2093 = vmatprep.subr.mxu1 %v2365_v8 }
 0x29e   : > { %2091 = vmatmul.mubr.msk.f32.vlgmr.msra.gmra.mxu1 %vm510_vm4, %v497_v26 }
 0x29f   : > { %2095 = vmatprep.mubr.msk.f32.mxu1 %vm2366_vm1, %v2365_v8 }
 0x305   : > { %v586_v32 = vpop.permute.xlu1 %585 }
 0x306   : > { %2094 = vmatpush3.xpose.msk.msra.mxu1 %vm510_vm4, %v586_v32 }
 0x307   : > { %2098 = vmatprep.subr.mxu1 %v2365_v8 }
 0x309   : > { %2096 = vmatmul.mubr.msk.f32.vlgmr.msra.gmra.mxu1 %vm510_vm4, %v2524_v28  ;;  %v662_v33 = vpop.permute.xlu1 %661 }
 0x30a   : > { %2099 = vmatpush3.xpose.msk.msra.mxu1 %vm510_vm4, %v662_v33  ;;  %2100 = vmatprep.mubr.msk.f32.mxu1 %vm2366_vm1, %v2365_v8 }
 0x30b   : > { %2103 = vmatprep.subr.mxu1 %v2365_v8 }
 0x30d   : > { %2101 = vmatmul.mubr.msk.f32.vlgmr.msra.gmra.mxu1 %vm510_vm4, %v2527_v29  ;;  %v738_v34 = vpop.permute.xlu1 %737 }
 0x30e   : > { %2104 = vmatpush3.xpose.msk.msra.mxu1 %vm510_vm4, %v738_v34  ;;  %2105 = vmatprep.mubr.msk.f32.mxu1 %vm2366_vm1, %v2365_v8 }
 0x30f   : > { %2113 = vmatprep.subr.mxu1 %v2365_v8 }
 0x311   : > { %2106 = vmatmul.mubr.msk.f32.vlgmr.msra.gmra.mxu1 %vm510_vm4, %v2530_v30 }
 0x312   : > { %2115 = vmatprep.mubr.msk.f32.mxu1 %vm2366_vm1, %v2365_v8 }
 0x35e   : > { %v581_v35 = vpop.f32.mrf.mxu1 }
 0x35f   : > { %v813_v36 = vsel %vm510_vm4, %v581_v35, -inf }
 0x360   : > { %814 = vmax.xlane.f32.xlu1 %v813_v36  ;;  %v2092_v37 = vpop.f32.mrf.mxu1 }
 0x3c9   : > { %v657_v38 = vpop.f32.mrf.mxu1 }
 0x3ca   : > { %v816_v39 = vsel %vm510_vm4, %v657_v38, -inf }
 0x3cb   : > { %817 = vmax.xlane.f32.xlu0 %v816_v39  ;;  %v2097_v40 = vpop.f32.mrf.mxu1 }
 0x3cd   : > { %v733_v41 = vpop.f32.mrf.mxu1 }
 0x3ce   : > { %v819_v42 = vsel %vm510_vm4, %v733_v41, -inf }
 0x3cf   : > { %820 = vmax.xlane.f32.xlu1 %v819_v42  ;;  %v2102_v43 = vpop.f32.mrf.mxu1 }
 0x3d1   : > { %v809_v44 = vpop.f32.mrf.mxu1 }
 0x3d2   : > { %v822_v45 = vsel %vm510_vm4, %v809_v44, -inf }
 0x3d3   : > { %823 = vmax.xlane.f32.xlu0 %v822_v45  ;;  %v2107_v46 = vpop.f32.mrf.mxu1 }
 0x3e0   : > { %861 = vrot.lane.b32.xlu1 %v497_v26, %s2371_s30  ;;  %v1168_v26 = vld [vmem:[%s2842_s4 + $0x18] sm:$0xff] }
 0x3e9   : > { %v815_v47 = vpop.xlane.xlu1 %814 }
 0x3ea   : > { %v825_v48 = vsub.f32 %v581_v35, %v815_v47 }
 0x3ec   : > { %v829_v49 = vmul.f32 1.442695, %v825_v48 }
 0x3ee   : > { %2283 = vpow2.f32 %v829_v49 }
 0x3fb   : > { %v2284_v50 = vpop.eup %2283 }
 0x3fc   : > { %v837_v51 = vsel %vm510_vm4, %v2284_v50, 0.0 }
 0x404   : > { %838 = vadd.xlane.f32.xlu1 %v837_v51 }
 0x454   : > { %v818_v52 = vpop.xlane.xlu0 %817 }
 0x455   : > { %v826_v53 = vsub.f32 %v657_v38, %v818_v52 }
 0x457   : > { %v831_v54 = vmul.f32 1.442695, %v826_v53 }
 0x458   : > { %v821_v55 = vpop.xlane.xlu1 %820 }
 0x459   : > { %2285 = vpow2.f32 %v831_v54  ;;  %v827_v56 = vsub.f32 %v733_v41, %v821_v55  ;;  %v1538_v55 = vld [vmem:[%s2843_s5 + $0x58] sm:$0xff] }
 0x45b   : > { %v833_v57 = vmul.f32 1.442695, %v827_v56  ;;  %v1536_v56 = vld [vmem:[%s2843_s5 + $0x48] sm:$0xff] }
 0x45c   : > { %v824_v58 = vpop.xlane.xlu0 %823  ;;  %v862_v59 = vpop.permute.xlu1 %861 }
 0x45d   : > { %2287 = vpow2.f32 %v833_v57  ;;  %v828_v60 = vsub.f32 %v809_v44, %v824_v58  ;;  %2109 = vmatpush3.msra.mxu0 %v862_v59  ;;  %v1535_v57 = vld [vmem:[%s2843_s5 + $0x40] sm:$0xff]  ;;  %v1534_v58 = vld [vmem:[%s2843_s5 + $0x38] sm:$0xff]  ;;  %v1533_v59 = vld [vmem:[%s2843_s5 + $0x30] sm:$0xff] }
 0x45e   : > { %2118 = vmatprep.subr.mxu0 %v2365_v8 }
 0x45f   : > { %v835_v61 = vmul.f32 1.442695, %v828_v60  ;;  %v1532_v60 = vld [vmem:[%s2843_s5 + $0x28] sm:$0xff] }
 0x461   : > { %2289 = vpow2.f32 %v835_v61  ;;  %v1531_v61 = vld [vmem:[%s2843_s5 + $0x20] sm:$0xff] }
 0x466   : > { %v2286_v62 = vpop.eup %2285 }
 0x467   : > { %v840_v63 = vsel %vm510_vm4, %v2286_v62, 0.0 }
 0x468   : > { %841 = vadd.xlane.f32.xlu0 %v840_v63  ;;  %v1529_v63 = vld [vmem:[%s2843_s5 + $0x10] sm:$0xff] }
 0x46a   : > { %v2288_v1 = vpop.eup %2287 }
 0x46b   : > { %v843_v2 = vsel %vm510_vm4, %v2288_v1, 0.0 }
 0x46c   : > { %844 = vadd.xlane.f32.xlu1 %v843_v2 }
 0x46e   : > { %v2290_v3 = vpop.eup %2289 }
 0x46f   : > { %v846_v4 = vsel %vm510_vm4, %v2290_v3, 0.0 }
 0x470   : > { %847 = vadd.xlane.f32.xlu0 %v846_v4 }
 0x47d   : > { %1013 = vrot.lane.b32.xlu1 %v2527_v29, %s2371_s30 }
 0x481   : > { %1089 = vrot.lane.b32.xlu1 %v2530_v30, %s2371_s30 }
 0x486   : > { %937 = vrot.lane.b32.xlu0 %v2524_v28, %s2371_s30 }
 0x48d   : > { %v839_v5 = vpop.xlane.xlu1 %838 }
 0x48e   : > { %2291 = vrcp.f32 %v839_v5 }
 0x49b   : > { %v2292_v6 = vpop.eup %2291 }
 0x49c   : > { %v857_v7 = vmul.f32 %v2292_v6, %v2284_v50 }
 0x49e   : > { %2111 = vmatmul.mubr.msk.f32.vlgmr.msra.gmra.mxu0 %vm510_vm4, %v857_v7 }
 0x49f   : > { %2120 = vmatprep.mubr.msk.f32.mxu0 %vm2366_vm1, %v2365_v8 }
 0x4f1   : > { %v842_v9 = vpop.xlane.xlu0 %841 }
 0x4f2   : > { %2293 = vrcp.f32 %v842_v9 }
 0x4f5   : > { %v845_v10 = vpop.xlane.xlu1 %844 }
 0x4f6   : > { %2295 = vrcp.f32 %v845_v10  ;;  %v1528_v10 = vld [vmem:[%s2843_s5 + $0x8] sm:$0xff] }
 0x4f9   : > { %v848_v11 = vpop.xlane.xlu0 %847  ;;  %v1014_v12 = vpop.permute.xlu1 %1013 }
 0x4fa   : > { %2297 = vrcp.f32 %v848_v11  ;;  %2119 = vmatpush3.msra.mxu0 %v1014_v12  ;;  %v1527_v11 = vld [vmem:[%s2843_s5] sm:$0xff] }
 0x4fb   : > { %2128 = vmatprep.subr.mxu0 %v2365_v8  ;;  %v1980_v12 = vld [vmem:[%s2847_s9] ss:$0 sm:$0xff] }
 0x4fd   : > { %v938_v13 = vpop.permute.xlu0 %937  ;;  %v1090_v16 = vpop.permute.xlu1 %1089 }
 0x4fe   : > { %2114 = vmatpush3.msra.mxu1 %v938_v13  ;;  %v383_v13 = vlaneseq }
 0x4ff   : > { %v2294_v14 = vpop.eup %2293  ;;  %2123 = vmatprep.subr.mxu1 %v2365_v8 }
 0x500   : > { %v858_v15 = vmul.f32 %v2294_v14, %v2286_v62  ;;  %v1530_v62 = vld [vmem:[%s2843_s5 + $0x18] sm:$0xff] }
 0x501   : > { %v1639_v14 = vld [vmem:[%s2845_s7 + $0x38] sm:$0xff] }
 0x502   : > { %2116 = vmatmul.mubr.msk.f32.vlgmr.msra.gmra.mxu1 %vm510_vm4, %v858_v15  ;;  %v1638_v15 = vld [vmem:[%s2845_s7 + $0x30] sm:$0xff] }
 0x503   : > { %v2296_v17 = vpop.eup %2295  ;;  %2124 = vmatpush3.msra.mxu1 %v1090_v16  ;;  %2125 = vmatprep.mubr.msk.f32.mxu1 %vm2366_vm1, %v2365_v8 }
 0x504   : > { %v859_v18 = vmul.f32 %v2296_v17, %v2288_v1  ;;  %2133 = vmatprep.subr.mxu1 %v2365_v8  ;;  %v1637_v17 = vld [vmem:[%s2845_s7 + $0x28] sm:$0xff] }
 0x506   : > { %2121 = vmatmul.mubr.msk.f32.vlgmr.msra.gmra.mxu0 %vm510_vm4, %v859_v18 }
 0x507   : > { %v2298_v20 = vpop.eup %2297  ;;  %2129 = vmatpush3.msra.mxu0 %v1165_v19  ;;  %2130 = vmatprep.mubr.msk.f32.mxu0 %vm2366_vm1, %v2365_v8  ;;  %v1981_v19 = vld [vmem:[%s2848_s10] ss:$0 sm:$0xff] }
 0x508   : > { %v860_v21 = vmul.f32 %v2298_v20, %v2290_v3  ;;  %2138 = vmatprep.subr.mxu0 %v2365_v8  ;;  %v2690_v20 = vshrl.u32 %v383_v13, 7 }
 0x50a   : > { %2126 = vmatmul.mubr.msk.f32.vlgmr.msra.gmra.mxu1 %vm510_vm4, %v860_v21  ;;  %vm1511_vm7 = vcmp.lt.s32.totalorder %v2690_v20, 7  ;;  %vm1506_vm8 = vcmp.gt.s32.totalorder %v2690_v20, 0 }
 0x50b   : > { %2135 = vmatprep.mubr.msk.f32.mxu1 %vm2366_vm1, %v2365_v8  ;;  %2134 = vmatpush3.msra.mxu1 %v1166_v22  ;;  %v1636_v22 = vld [vmem:[%s2845_s7 + $0x20] sm:$0xff] }
 0x50c   : > { %2143 = vmatprep.subr.mxu1 %v2365_v8 }
 0x55e   : > { %v933_v24 = vpop.f32.mrf.mxu0 }
 0x55f   : > { %2131 = vmatmul.mubr.msk.f32.vlgmr.msra.gmra.mxu0 %vm510_vm4, %v933_v24 }
 0x560   : > { %v2112_v25 = vpop.f32.mrf.mxu0  ;;  %2139 = vmatpush3.msra.mxu0 %v1167_v23  ;;  %2140 = vmatprep.mubr.msk.f32.mxu0 %vm2366_vm1, %v2365_v8 }
 0x561   : > { %2148 = vmatprep.subr.mxu0 %v2365_v8 }
 0x5c2   : > { %v1009_v27 = vpop.f32.mrf.mxu1 }
 0x5c3   : > { %2136 = vmatmul.mubr.msk.f32.vlgmr.msra.gmra.mxu1 %vm510_vm4, %v1009_v27 }
 0x5c4   : > { %v2117_v28 = vpop.f32.mrf.mxu1  ;;  %2144 = vmatpush3.msra.mxu1 %v1168_v26  ;;  %2145 = vmatprep.mubr.msk.f32.mxu1 %vm2366_vm1, %v2365_v8 }
 0x5c5   : > { %2175 = vmatprep.subr.mxu1 %v2365_v8 }
 0x5c6   : > { %v1085_v29 = vpop.f32.mrf.mxu0 }
 0x5c7   : > { %2141 = vmatmul.mubr.msk.f32.vlgmr.msra.gmra.mxu0 %vm510_vm4, %v1085_v29 }
 0x5c8   : > { %v2122_v30 = vpop.f32.mrf.mxu0  ;;  %2172 = vmatprep.mubr.msk.f32.mxu0 %vm2366_vm1, %v2365_v8  ;;  %2149 = vmatpush3.msra.mxu0 %v1538_v55  ;;  %v1990_v55 = vld [vmem:[%s2845_s7 + $0x70] sm:$0xff] }
 0x5c9   : > { %2150 = vmatprep.subr.mxu0 %v2365_v8 }
 0x5ca   : > { %v1161_v31 = vpop.f32.mrf.mxu1 }
 0x5cb   : > { %2146 = vmatmul.mubr.msk.f32.vlgmr.msra.gmra.mxu1 %vm510_vm4, %v1161_v31  ;;  %v2001_v31 = vld [vmem:[%s2845_s7 + $0xb8] sm:$0xff] }
 0x5cc   : > { %v2127_v32 = vpop.f32.mrf.mxu1  ;;  %2191 = vmatprep.mubr.msk.f32.mxu1 %vm2366_vm1, %v2365_v8  ;;  %2176 = vmatpush3.msra.mxu1 %v1639_v14 }
 0x5cd   : > { %2177 = vmatprep.subr.mxu1 %v2365_v8 }
 0x5ce   : > { %2178 = vmatpush3.msra.mxu1 %v1638_v15 }
 0x5cf   : > { %2179 = vmatprep.subr.mxu1 %v2365_v8 }
 0x5d0   : > { %2180 = vmatpush3.msra.mxu1 %v1637_v17 }
 0x5d1   : > { %2181 = vmatprep.subr.mxu1 %v2365_v8 }
 0x5d2   : > { %2182 = vmatpush3.msra.mxu1 %v1636_v22 }
 0x5d3   : > { %2183 = vmatprep.subr.mxu1 %v2365_v8 }
 0x61f   : > { %v1238_v33 = vpop.f32.mrf.mxu0 }
 0x620   : > { %v1461_v39 = vsel %vm387_vm0, %v1238_v33, 0.0  ;;  %v2000_v33 = vld [vmem:[%s2845_s7 + $0xb0] sm:$0xff] }
 0x621   : > { %v2132_v34 = vpop.f32.mrf.mxu0 }
 0x622   : > { %v1999_v34 = vld [vmem:[%s2845_s7 + $0xa8] sm:$0xff] }
 0x683   : > { %v1311_v35 = vpop.f32.mrf.mxu1 }
 0x684   : > { %v1462_v37 = vsel %vm387_vm0, %v1311_v35, 0.0  ;;  %v1998_v35 = vld [vmem:[%s2845_s7 + $0xa0] sm:$0xff] }
 0x685   : > { %v2137_v36 = vpop.f32.mrf.mxu1  ;;  %v1463_v41 = vadd.f32 %v1462_v37, %v1461_v39  ;;  %v1997_v37 = vld [vmem:[%s2845_s7 + $0x98] sm:$0xff]  ;;  %v1996_v39 = vld [vmem:[%s2845_s7 + $0x90] sm:$0xff] }
 0x686   : > { %v1635_v36 = vld [vmem:[%s2845_s7 + $0x18] sm:$0xff] }
 0x687   : > { %v1384_v38 = vpop.f32.mrf.mxu0  ;;  %2184 = vmatpush3.msra.mxu1 %v1635_v36 }
 0x688   : > { %v1464_v40 = vsel %vm387_vm0, %v1384_v38, 0.0  ;;  %2185 = vmatprep.subr.mxu1 %v2365_v8  ;;  %v1634_v38 = vld [vmem:[%s2845_s7 + $0x10] sm:$0xff] }
 0x689   : > { %v2142_v42 = vpop.f32.mrf.mxu0  ;;  %v1465_v43 = vadd.f32 %v1464_v40, %v1463_v41  ;;  %2186 = vmatpush3.msra.mxu1 %v1634_v38  ;;  %v1633_v40 = vld [vmem:[%s2845_s7 + $0x8] sm:$0xff] }
 0x68a   : > { %2187 = vmatprep.subr.mxu1 %v2365_v8  ;;  %v1995_v41 = vld [vmem:[%s2845_s7 + $0x88] sm:$0xff]  ;;  %v1632_v42 = vld [vmem:[%s2845_s7] sm:$0xff] }
 0x68b   : > { %v1457_v44 = vpop.f32.mrf.mxu1  ;;  %2188 = vmatpush3.msra.mxu1 %v1633_v40 }
 0x68c   : > { %v1466_v45 = vsel %vm387_vm0, %v1457_v44, 0.0  ;;  %2189 = vmatprep.subr.mxu1 %v2365_v8  ;;  %v1982_v44 = vld [vmem:[%s2844_s6] ss:$0 sm:$0xff] }
 0x68d   : > { %v1467_v46 = vadd.f32 %v1466_v45, %v1465_v43  ;;  %v2147_v47 = vpop.f32.mrf.mxu1  ;;  %v1994_v43 = vld [vmem:[%s2845_s7 + $0x80] sm:$0xff]  ;;  %2190 = vmatpush3.msra.mxu1 %v1632_v42 }
 0x68e   : > { %2194 = vmatprep.subr.mxu1 %v2365_v8 }
 0x68f   : > { %v2620_v48 = vadd.f32 %v1467_v46, %v2487_v0  ;;  %v1537_v0 = vld [vmem:[%s2843_s5 + $0x50] sm:$0xff] }
 0x690   : > { %2151 = vmatpush3.msra.mxu0 %v1537_v0  ;;  %v1989_v0 = vld [vmem:[%s2845_s7 + $0x68] sm:$0xff] }
 0x691   : > { %v1471_v49 = vsel %vm387_vm0, %v2620_v48, 0.0  ;;  %2152 = vmatprep.subr.mxu0 %v2365_v8 }
 0x692   : > { %1472 = vadd.xlane.f32.xlu0 %v1471_v49  ;;  %2153 = vmatpush3.msra.mxu0 %v1536_v56  ;;  %v1988_v56 = vld [vmem:[%s2845_s7 + $0x60] sm:$0xff] }
 0x693   : > { %2154 = vmatprep.subr.mxu0 %v2365_v8 }
 0x694   : > { %2155 = vmatpush3.msra.mxu0 %v1535_v57  ;;  %v1987_v57 = vld [vmem:[%s2845_s7 + $0x58] sm:$0xff] }
 0x695   : > { %2156 = vmatprep.subr.mxu0 %v2365_v8 }
 0x696   : > { %2157 = vmatpush3.msra.mxu0 %v1534_v58  ;;  %v1986_v58 = vld [vmem:[%s2845_s7 + $0x50] sm:$0xff] }
 0x697   : > { %2158 = vmatprep.subr.mxu0 %v2365_v8 }
 0x698   : > { %2159 = vmatpush3.msra.mxu0 %v1533_v59  ;;  %v1985_v59 = vld [vmem:[%s2845_s7 + $0x48] sm:$0xff] }
 0x699   : > { %2160 = vmatprep.subr.mxu0 %v2365_v8 }
 0x69a   : > { %2161 = vmatpush3.msra.mxu0 %v1532_v60  ;;  %v1984_v60 = vld [vmem:[%s2845_s7 + $0x40] sm:$0xff] }
 0x69b   : > { %2162 = vmatprep.subr.mxu0 %v2365_v8 }
 0x69c   : > { %2163 = vmatpush3.msra.mxu0 %v1531_v61 }
 0x69d   : > { %2164 = vmatprep.subr.mxu0 %v2365_v8 }
 0x69e   : > { %2165 = vmatpush3.msra.mxu0 %v1530_v62 }
 0x69f   : > { %2166 = vmatprep.subr.mxu0 %v2365_v8 }
 0x6a0   : > { %2167 = vmatpush3.msra.mxu0 %v1529_v63 }
 0x6a1   : > { %2168 = vmatprep.subr.mxu0 %v2365_v8 }
 0x6a2   : > { %2169 = vmatpush3.msra.mxu0 %v1528_v10 }
 0x6a3   : > { %2170 = vmatprep.subr.mxu0 %v2365_v8 }
 0x6a4   : > { %2171 = vmatpush3.msra.mxu0 %v1527_v11 }
 0x6a5   : > { %2213 = vmatprep.subr.mxu0 %v2365_v8 }
 0x71b   : > { %v1473_v50 = vpop.xlane.xlu0 %1472 }
 0x71c   : > { %v1474_v51 = vmul.f32 0.03125, %v1473_v50 }
 0x71e   : > { %v1475_v52 = vsub.f32 %v2620_v48, %v1474_v51 }
 0x720   : > { %v1476_v53 = vmul.f32 %v1475_v52, %v1475_v52  ;;  %v1497_v16 = vmul.f32 %v1980_v12, %v1475_v52  ;;  %v1991_v52 = vld [vmem:[%s2845_s7 + $0x78] sm:$0xff] }
 0x722   : > { %v1477_v54 = vsel %vm387_vm0, %v1476_v53, 0.0 }
 0x723   : > { %1478 = vadd.xlane.f32.xlu1 %v1477_v54 }
 0x7ac   : > { %v1479_v1 = vpop.xlane.xlu1 %1478 }
 0x7ad   : > { %v1480_v2 = vmul.f32 0.032258064, %v1479_v1 }
 0x7af   : > { %2299 = vrsqrt.f32 %v1480_v2  ;;  %vm1483_vm5 = vcmp.eq.f32.partialorder %v1480_v2, inf  ;;  %v1486_v5 = vand.u32 2147483648, %v1480_v2  ;;  %vm1485_vm6 = vcmp.eq.f32.partialorder %v1480_v2, 0.0 }
 0x7bc   : > { %v2300_v3 = vpop.eup %2299 }
 0x7bd   : > { %v1482_v4 = vmul.f32 %v2300_v3, %v1480_v2 }
 0x7bf   : > { %v1484_v6 = vsel %vm1483_vm5, %v1480_v2, %v1482_v4  ;;  %v2003_v4 = vld [vmem:[%s2846_s8] ss:$0 sm:$0xff] }
 0x7c0   : > { %v1487_v7 = vsel %vm1485_vm6, %v1486_v5, %v1484_v6 }
 0x7c1   : > { %v1488_v9 = vadd.f32 1e-06, %v1487_v7 }
 0x7c3   : > { %2301 = vrcp.f32 %v1488_v9 }
 0x7d0   : > { %v2302_v18 = vpop.eup %2301 }
 0x7d1   : > { %v1498_v21 = vmul.f32 %v2302_v18, %v1497_v16 }
 0x7d3   : > { %v1505_v23 = vadd.f32 %v1981_v19, %v1498_v21 }
 0x7d5   : > { %1517 = vrot.lane.b32.xlu0 %v1505_v23, %s2372_s29  ;;  %v1512_v24 = vrot.slane %v1505_v23, 1  ;;  %v1507_v26 = vrot.slane %v1505_v23, 7 }
 0x7d7   : > { %v1515_v25 = vsel %vm1511_vm7, %v1512_v24, 0.0  ;;  %v1510_v28 = vsel %vm1506_vm8, %v1507_v26, 0.0 }
 0x7d8   : > { %1521 = vrot.lane.b32.xlu1 %v1515_v25, %s2371_s30  ;;  %s375_s30 = sand.u32 1, %s2355_s18  }
 0x7d9   : > { %s1959_s14 = sshll.u32 %s375_s30, 3  ;;  %s1883_s0 = scalar_lea.sflag [#allocation3], %s375_s30 }
 0x7da   : > { %s377_s24 = scalar_lea.vmem [#allocation2], %s1959_s14  ;;  %s2309_s14 = scalar_lea.vmem %s2308_s21, 256 }
 0x7db   : > { %s1896_s25 = sshll.u32 %s377_s24, 4  ;;  %s1897_s25 = int_to_ptr.vmem [resolvable:$true] %s1896_s25 }
 0x7dc   : > { %s2303_s15 = scalar_lea.vmem %s1897_s25, 128  ;;  %p2310_p0 = scmp.lt.s32.totalorder %s1897_s25, %s2308_s21 }
 0x7dd   : > { %p2304_p11 = scmp.ne.s32.totalorder %s1897_s25, %s2303_s15  ;;  %p2311_p1 = scmp.lt.s32.totalorder %s2309_s14, %s2303_s15 }
 0x7df   : > { %p2305_p12 = pnand %p2304_p11, %p2472_p5  ;;  %p2312_p2 = por %p2311_p1, %p2310_p0 }
 0x7e1   : > { %p2306_p13 = pneg %p2305_p12 }
 0x7e3   : > { %p2313_p3 = pnand %p2312_p2, %p2306_p13 }
 0x847   : > { %v1518_v27 = vpop.permute.xlu0 %1517 }
 0x848   : > { %v1524_v29 = vsel %vm387_vm0, %v1510_v28, %v1518_v27 }
 0x84a   : > { %v1522_v30 = vpop.permute.xlu1 %1521 }
 0x84b   : > { %v1526_v32 = vsel %vm1525_vm9, %v1524_v29, %v1522_v30 }
 0x84c   : > { %2173 = vmatmul.mubr.msk.f32.vlgmr.msra.gmra.mxu0 %vm1546_vm10, %v1526_v32 }
 0x84d   : > { %2214 = vmatpush3.msra.mxu0 %v2001_v31  ;;  %2229 = vmatprep.mubr.msk.f32.mxu0 %vm2366_vm1, %v2365_v8 }
 0x84e   : > { %2215 = vmatprep.subr.mxu0 %v2365_v8 }
 0x84f   : > { %2216 = vmatpush3.msra.mxu0 %v2000_v33 }
 0x850   : > { %2217 = vmatprep.subr.mxu0 %v2365_v8 }
 0x851   : > { %2218 = vmatpush3.msra.mxu0 %v1999_v34 }
 0x852   : > { %2219 = vmatprep.subr.mxu0 %v2365_v8 }
 0x853   : > { %2220 = vmatpush3.msra.mxu0 %v1998_v35 }
 0x854   : > { %2221 = vmatprep.subr.mxu0 %v2365_v8 }
 0x855   : > { %2222 = vmatpush3.msra.mxu0 %v1997_v37 }
 0x856   : > { %2223 = vmatprep.subr.mxu0 %v2365_v8 }
 0x857   : > { %2224 = vmatpush3.msra.mxu0 %v1996_v39 }
 0x858   : > { %2225 = vmatprep.subr.mxu0 %v2365_v8 }
 0x859   : > { %2226 = vmatpush3.msra.mxu0 %v1995_v41 }
 0x85a   : > { %2227 = vmatprep.subr.mxu0 %v2365_v8 }
 0x85b   : > { %2228 = vmatpush3.msra.mxu0 %v1994_v43 }
 0x90c   : > { %v1616_v45 = vpop.f32.mrf.mxu0 }
 0x90d   : > { %v1617_v46 = vadd.f32 %v1982_v44, %v1616_v45 }
 0x90e   : > { %v2174_v47 = vpop.f32.mrf.mxu0 }
 0x90f   : > { %v1620_v49 = vmax.f32 %v1617_v46, 0.0 }
 0x911   : > { %v1630_v50 = vrot.slane %v1620_v49, 7  ;;  %v1786_v51 = vrot.slane %v1620_v49, 1 }
 0x913   : > { %v1631_v53 = vsel %vm1506_vm8, %v1630_v50, 0.0  ;;  %v1787_v54 = vsel %vm1511_vm7, %v1786_v51, 0.0 }
 0x914   : > { %2192 = vmatmul.mubr.msk.f32.vlgmr.msra.gmra.mxu1 %vm1525_vm9, %v1631_v53  ;;  %2230 = vmatmul.mubr.msk.f32.vlgmr.msra.gmra.mxu0 %vm1525_vm9, %v1787_v54 }
 0x915   : > { %2195 = vmatpush3.msra.mxu1 %v1991_v52  ;;  %2210 = vmatprep.mubr.msk.f32.mxu1 %vm2366_vm1, %v2365_v8 }
 0x916   : > { %2196 = vmatprep.subr.mxu1 %v2365_v8 }
 0x917   : > { %2197 = vmatpush3.msra.mxu1 %v1990_v55 }
 0x918   : > { %2198 = vmatprep.subr.mxu1 %v2365_v8 }
 0x919   : > { %2199 = vmatpush3.msra.mxu1 %v1989_v0 }
 0x91a   : > { %2200 = vmatprep.subr.mxu1 %v2365_v8 }
 0x91b   : > { %2201 = vmatpush3.msra.mxu1 %v1988_v56 }
 0x91c   : > { %2202 = vmatprep.subr.mxu1 %v2365_v8 }
 0x91d   : > { %2203 = vmatpush3.msra.mxu1 %v1987_v57 }
 0x91e   : > { %2204 = vmatprep.subr.mxu1 %v2365_v8 }
 0x91f   : > { %2205 = vmatpush3.msra.mxu1 %v1986_v58 }
 0x920   : > { %2206 = vmatprep.subr.mxu1 %v2365_v8 }
 0x921   : > { %2207 = vmatpush3.msra.mxu1 %v1985_v59 }
 0x922   : > { %2208 = vmatprep.subr.mxu1 %v2365_v8 }
 0x923   : > { %2209 = vmatpush3.msra.mxu1 %v1984_v60 }
 0x924   : > { %2211 = vmatmul.mubr.msk.f32.vlgmr.msra.gmra.mxu1 %vm1525_vm9, %v1620_v49 }
 0x9d4   : > { %v1709_v61 = vpop.f32.mrf.mxu1  ;;  %v1866_v62 = vpop.f32.mrf.mxu0 }
 0x9d6   : > { %v2193_v63 = vpop.f32.mrf.mxu1  ;;  %v2231_v1 = vpop.f32.mrf.mxu0 }
 0x9e4   : > { %v1782_v2 = vpop.f32.mrf.mxu1 }
 0x9e5   : > { %v1783_v3 = vadd.f32 %v1782_v2, %v1709_v61 }
 0x9e6   : > { %v2212_v5 = vpop.f32.mrf.mxu1 }
 0x9e7   : > { %v1870_v6 = vadd.f32 %v1866_v62, %v1783_v3 }
 0x9e9   : > { %v1878_v7 = vadd.f32 %v2003_v4, %v1870_v6 }
 0x9eb   : > { %v1879_v8 = vmax.f32 %v1878_v7, 0.0 }
 0x9ed   : > { %v1880_v9 = vadd.f32 %v1879_v8, %v2620_v48 }
 0x9ef   : > { %1881 = vst.msk [vmem:[%s377_s24] sm:$0xff] %vm387_vm0, %v1880_v9 }
 0x9f0   : > { %2316 = shalt.err (!%p2313_p3)
}
 0x9f1   : > { %s2317_s29 = scalar_lea.hbm %s1894_s13, 128  ;;  %s2321_s24 = scalar_lea.hbm %s2849_s11, 256 }
 0x9f2   : > { %p2318_p4 = scmp.ne.s32.totalorder %s1894_s13, %s2317_s29  ;;  %p2322_p9 = scmp.lt.s32.totalorder %s1894_s13, %s2849_s11 }
 0x9f3   : > { %p2323_p10 = scmp.lt.s32.totalorder %s2321_s24, %s2317_s29 }
 0x9f4   : > { %p2319_p7 = pnand %p2318_p4, %p2472_p5 }
 0x9f5   : > { %p2324_p11 = por %p2323_p10, %p2322_p9 }
 0x9f6   : > { %p2320_p8 = pneg %p2319_p7 }
 0x9f8   : > { %p2325_p12 = pnand %p2324_p11, %p2320_p8 }
 0x9fa   : > { %2328 = shalt.err (!%p2325_p12)
}
 0x9fb   : > { %2232 = dma.vmem_to_hbm [thread:$0]  (%p2472_p5), %s1897_s25, 128, %s1894_s13, %s1883_s0  }
 0x9fc PF: > { %p2238_p13 = scmp.ge.s32.totalorder %s2363_s20, 2  ;;  %s1908_s15 = sand.u32 1, %s2351_s17  }
 0x9fd   : > { %s1909_s16 = scalar_lea.sflag [#allocation3], %s1908_s15 }
 0x9fe   : > { %p2235_p0 = pnand %p2238_p13, %p2476_p6 }
 0xa00   : > { %p2236_p1 = pneg %p2235_p0 }
 0xa02   : > { %2346 = dma.done.wait (%p2236_p1), %s1909_s16, 128  }
 0xa03   : > { %2348 = vsyncadd (%p2236_p1), %s1909_s16, 4294967168  ;;  %p21_p2 = scmp.ge.s32.totalorder %s2459_s23, 4   ;;  %s2856_s17 = smov %s2355_s18 }
 0xa04   : > { %s2857_s18 = smov %s2359_s19  ;;  %s2858_s19 = smov %s2470_s26 }
 0xa05   : > { %s2859_s20 = smov %s2459_s23  ;;  %23 = sbr.rel (!%p21_p2) target bundleno = 6 (0x6), region = 101 }
 0xa0a   :  { %1914 = vsyncpa [#allocation3], 1 }
 0xa0b   :  { %1916 = vsyncpa [#allocation3 + $0x1], 1 }

</bundles_post_ra>
